<compile_context>
chip_gen: v5e
topology: v5e:2x2
jax: 0.10.0
libtpu: 0.0.40
codegen_flags: <defaults>
</compile_context>

<pallas_src>
import functools
from collections import namedtuple

import jax
import jax.numpy as jnp
from jax.experimental import pallas as pl
from jax.experimental.pallas import tpu as pltpu

Scene = namedtuple("Scene", ["position", "number", "type", "size", "color"])
SceneProb = namedtuple(
    "SceneProb",
    ["position_prob", "number_prob", "type_prob", "size_prob", "color_prob"],
)

# RAVEN attribute cardinalities (as in the NVSA reference code this module comes from).
DIM_POSITION_2x2 = 4
DIM_NUMBER_2x2 = 4
DIM_POSITION_3x3 = 9
DIM_NUMBER_3x3 = 9
DIM_TYPE = 5
DIM_SIZE = 6
DIM_COLOR = 10


def _round_up(x, m):
    return ((x + m - 1) // m) * m


# ----------------------------- Pallas kernel ------------------------------- #

def _fused_pmf_matmul_kernel(pmf_ref, dict_ref, out_ref, *, scale):
    # pmf_ref: [TM, V_pad], dict_ref: [V_pad, D], out_ref: [TM, D]
    acc = jnp.dot(pmf_ref[...], dict_ref[...], preferred_element_type=jnp.float32)
    if scale != 1.0:
        acc = acc * jnp.float32(scale)
    out_ref[...] = acc


def fused_pmf_matmul(pmf_cat, dict_cat, *, scale=1.0, tm_target=512):
    """One tiled MXU matmul:  out = scale * (pmf_cat @ dict_cat).

    pmf_cat:  (M, V_pad) f32, V_pad a multiple of 128 (lane-dense, zero-padded).
    dict_cat: (V_pad, D) f32, D a multiple of 128.
    returns:  (M, D) f32.
    """
    M, V = pmf_cat.shape
    Vd, D = dict_cat.shape
    assert V == Vd and V % 128 == 0 and D % 128 == 0

    m8 = _round_up(M, 8)
    if m8 <= tm_target:
        tm = m8
        m_pad = m8
    else:
        tm = tm_target
        m_pad = _round_up(M, tm)
    if m_pad != M:
        pmf_cat = jnp.pad(pmf_cat, ((0, m_pad - M), (0, 0)))

    grid = (m_pad // tm,)
    kernel = functools.partial(_fused_pmf_matmul_kernel, scale=float(scale))

    bytes_accessed = 4 * (m_pad * V + V * D + m_pad * D)
    out = pl.pallas_call(
        kernel,
        out_shape=jax.ShapeDtypeStruct((m_pad, D), jnp.float32),
        grid=grid,
        in_specs=[
            pl.BlockSpec((tm, V), lambda i: (i, 0)),   # pmf tile, pipelined over M
            pl.BlockSpec((V, D), lambda i: (0, 0)),    # codebook, VMEM-resident
        ],
        out_specs=pl.BlockSpec((tm, D), lambda i: (i, 0)),
        compiler_params=pltpu.CompilerParams(
            dimension_semantics=("parallel",),          # shard M across TCs (v7x)
            vmem_limit_bytes=32 * 1024 * 1024,          # safe on v5e/v6e/v7x
        ),
        cost_estimate=pl.CostEstimate(
            flops=2 * m_pad * V * D,
            transcendentals=0,
            bytes_accessed=bytes_accessed,
        ),
    )(pmf_cat, dict_cat)
    return out[:M]


# ----------------------------- VSAConverter -------------------------------- #

def block_discrete_codebook(key, d, k, scene_dim):
    """Deterministic synthetic block codes: (scene_dim, k, d // k), unit-norm blocks."""
    codes = jax.random.normal(key, (scene_dim, k, d // k), dtype=jnp.float32)
    codes = codes / jnp.linalg.norm(codes, axis=-1, keepdims=True)
    return codes


class VSAConverter:
    def __init__(self, constellation, dictionary, dictionary_type="Discrete",
                 context_dim=8, attributes_superposition=False,
                 key=jax.random.PRNGKey(0)):
        self.constellation = constellation
        self.dictionary = dictionary
        self.d = dictionary.shape[1] * dictionary.shape[2]
        self.k = dictionary.shape[1]
        self.dictionary_type = dictionary_type
        self.compute_attribute_dicts()
        self._build_fused_dicts()
        self.context_dim = context_dim
        self.attributes_superposition = attributes_superposition
        if self.attributes_superposition:
            self.attribute_keys = block_discrete_codebook(
                key, d=self.d, k=self.k, scene_dim=5
            )

    # --- dictionary slicing (matches the PyTorch reference) --- #
    def compute_attribute_dicts(self):
        if "distribute" in self.constellation:
            if "four" in self.constellation:
                DIM_POSITION = DIM_POSITION_2x2
                DIM_NUMBER = DIM_NUMBER_2x2
            else:
                DIM_POSITION = DIM_POSITION_3x3
                DIM_NUMBER = DIM_NUMBER_3x3
            self.position_dictionary = self.dictionary[:DIM_POSITION]
            self.number_dictionary = self.dictionary[:DIM_NUMBER]
        if self.dictionary_type == "Discrete":
            self.type_dictionary = self.dictionary[: DIM_TYPE + 1]
            self.size_dictionary = self.dictionary[: DIM_SIZE + 1]
        else:
            self.type_dictionary = self.dictionary[1 : DIM_TYPE + 2]
            self.size_dictionary = self.dictionary[1 : DIM_SIZE + 2]
        self.color_dictionary = self.dictionary[: DIM_COLOR + 1]

    # --- fused codebooks (built once at init) --- #
    def _attr_dicts(self):
        attrs = []
        if "distribute" in self.constellation:
            attrs.append(self.position_dictionary)
            attrs.append(self.number_dictionary)
        attrs.extend([self.type_dictionary, self.size_dictionary, self.color_dictionary])
        return attrs

    def _build_fused_dicts(self):
        attrs = self._attr_dicts()
        self._num_attrs = len(attrs)
        self._attr_sizes = [int(a.shape[0]) for a in attrs]
        self._v_total = sum(self._attr_sizes)
        self._v_pad = _round_up(max(self._v_total, 1), 128)  # lane-dense contraction dim
        d = self.d

        stacked = jnp.zeros((self._v_pad, d), dtype=jnp.float32)
        blockdiag = jnp.zeros((self._v_pad, self._num_attrs * d), dtype=jnp.float32)
        off = 0
        for a, dic in enumerate(attrs):
            va = int(dic.shape[0])
            flat = dic.reshape(va, d).astype(jnp.float32)
            stacked = stacked.at[off:off + va, :].set(flat)
            blockdiag = blockdiag.at[off:off + va, a * d:(a + 1) * d].set(flat)
            off += va
        self._dict_stacked = stacked        # [V_pad, d]        (superposed path)
        self._dict_blockdiag = blockdiag    # [V_pad, N*d]      (per-attribute path)

    def _pmf_cat(self, scene_prob):
        probs = []
        if "distribute" in self.constellation:
            probs.append(scene_prob.position_prob)
            probs.append(scene_prob.number_prob)
        probs.extend([scene_prob.type_prob, scene_prob.size_prob, scene_prob.color_prob])
        B, S = probs[0].shape[0], probs[0].shape[1]
        cat = jnp.concatenate([p.astype(jnp.float32) for p in probs], axis=-1)
        cat = cat.reshape(B * S, self._v_total)
        if self._v_pad != self._v_total:
            cat = jnp.pad(cat, ((0, 0), (0, self._v_pad - self._v_total)))
        return cat, B, S

    # --- forward pieces --- #
    def compute_values(self, scene_prob):
        """All attribute pmf2vec matmuls in ONE pallas_call via a block-diagonal codebook."""
        pmf_cat, B, S = self._pmf_cat(scene_prob)
        out = fused_pmf_matmul(pmf_cat, self._dict_blockdiag, scale=1.0)  # [M, N*d]
        d, k, dk = self.d, self.k, self.d // self.k
        vecs = [out[:, a * d:(a + 1) * d].reshape(B, S, k, dk)
                for a in range(self._num_attrs)]
        if "distribute" in self.constellation:
            position, number, typ, size, color = vecs
        else:
            position, number = None, None
            typ, size, color = vecs
        return Scene(position, number, typ, size, color)

    def compute_attributes_superposition(self, scene):
        # NOTE: in the reference PyTorch code the binding_circular results are computed
        # and then discarded — the returned value is just the attribute-wise average.
        # TODO(synk): binding_circular outputs are dead code in the reference forward,
        # so only the averaging semantics are kept (the fused forward path below folds
        # the average into the matmul epilogue instead of calling this).
        if "distribute" in self.constellation:
            return (scene.position + scene.number + scene.type + scene.size + scene.color) / 5.0
        return (scene.type + scene.size + scene.color) / 3.0

    def forward(self, scene_prob):
        if self.attributes_superposition:
            # Fused path: average == (1/N) * pmf_cat @ dict_stacked — one kernel, no
            # per-attribute intermediates ever hit HBM.
            pmf_cat, B, S = self._pmf_cat(scene_prob)
            scale = 1.0 / float(self._num_attrs)
            out = fused_pmf_matmul(pmf_cat, self._dict_stacked, scale=scale)  # [M, d]
            return out.reshape(B, S, self.k, self.d // self.k)
        return self.compute_values(scene_prob)

    __call__ = forward


# ------------------------------ reference ---------------------------------- #

def _pmf2vec_ref(codebook, pmf):
    V, k, dk = codebook.shape
    B, S, _ = pmf.shape
    vec = jnp.matmul(pmf.astype(jnp.float32), codebook.reshape(V, k * dk).astype(jnp.float32),
                     precision=jax.lax.Precision.HIGHEST)
    return vec.reshape(B, S, k, dk)


# --------------------------------- main ------------------------------------ #

if __name__ == "__main__":
    key = jax.random.PRNGKey(0)
    k_dict, k_keys, kp, kn, kt, ks, kc = jax.random.split(key, 7)

    # Small synthetic shapes: dictionary of 16 block codes, k=4 blocks, d//k=64 -> d=256.
    NUM_CODES, K, DK = 16, 4, 64
    dictionary = jax.random.normal(k_dict, (NUM_CODES, K, DK), dtype=jnp.float32)

    B, S = 2, 8  # batch, objects-per-scene
    constellation = "distribute_four"

    def make_prob(k_, V):
        logits = jax.random.normal(k_, (B, S, V), dtype=jnp.float32)
        return jax.nn.softmax(logits, axis=-1)

    scene_prob = SceneProb(
        position_prob=make_prob(kp, DIM_POSITION_2x2),
        number_prob=make_prob(kn, DIM_NUMBER_2x2),
        type_prob=make_prob(kt, DIM_TYPE + 1),
        size_prob=make_prob(ks, DIM_SIZE + 1),
        color_prob=make_prob(kc, DIM_COLOR + 1),
    )

    # Path 1: plain forward (attributes_superposition=False) -> Scene of block-code vecs.
    conv = VSAConverter(constellation, dictionary, dictionary_type="Discrete",
                        attributes_superposition=False, key=k_keys)
    scene = conv(scene_prob)
    jax.block_until_ready(scene.color)

    # Path 2: attributes_superposition=True -> averaged scene vector.
    conv_sup = VSAConverter(constellation, dictionary, dictionary_type="Discrete",
                            attributes_superposition=True, key=k_keys)
    scene_sup = conv_sup(scene_prob)
    jax.block_until_ready(scene_sup)

    # Correctness check against pure-JAX reference.
    ref_pos = _pmf2vec_ref(conv.position_dictionary, scene_prob.position_prob)
    ref_num = _pmf2vec_ref(conv.number_dictionary, scene_prob.number_prob)
    ref_typ = _pmf2vec_ref(conv.type_dictionary, scene_prob.type_prob)
    ref_siz = _pmf2vec_ref(conv.size_dictionary, scene_prob.size_prob)
    ref_col = _pmf2vec_ref(conv.color_dictionary, scene_prob.color_prob)
    ref_sup = (ref_pos + ref_num + ref_typ + ref_siz + ref_col) / 5.0

    assert scene.position.shape == (B, S, K, DK)
    assert scene_sup.shape == (B, S, K, DK)
    assert jnp.allclose(scene.position, ref_pos, atol=1e-5)
    assert jnp.allclose(scene.number, ref_num, atol=1e-5)
    assert jnp.allclose(scene.type, ref_typ, atol=1e-5)
    assert jnp.allclose(scene.size, ref_siz, atol=1e-5)
    assert jnp.allclose(scene.color, ref_col, atol=1e-5)
    assert jnp.allclose(scene_sup, ref_sup, atol=1e-5)

    print("KERNEL_OK")
</pallas_src>

<mosaic_0001>
module attributes {stable_mosaic.version = 11 : i64} {
  func.func @_fused_pmf_matmul_kernel(%arg0: i32, %arg1: memref<16x128xf32, #tpu.memory_space<vmem>>, %arg2: memref<128x1280xf32, #tpu.memory_space<vmem>>, %arg3: memref<16x1280xf32, #tpu.memory_space<vmem>>) attributes {dimension_semantics = [#tpu.dimension_semantics<parallel>], iteration_bounds = array<i64: 1>, scalar_prefetch = 0 : i64, scratch_operands = 0 : i64, tpu.core_type = #tpu.core_type<tc>, window_params = [{transform_indices = @transform_0, window_bounds = array<i64: 16, 128>}, {pipeline_mode = #tpu.pipeline_mode<synchronous>, transform_indices = @transform_1, window_bounds = array<i64: 128, 1280>}, {transform_indices = @transform_2, window_bounds = array<i64: 16, 1280>}]} {
    %c0 = arith.constant 0 : index
    %c0_0 = arith.constant 0 : index
    %0 = vector.load %arg1[%c0, %c0_0] : memref<16x128xf32, #tpu.memory_space<vmem>>, vector<16x128xf32>
    %c0_1 = arith.constant 0 : index
    %c0_2 = arith.constant 0 : index
    %1 = vector.load %arg2[%c0_1, %c0_2] : memref<128x1280xf32, #tpu.memory_space<vmem>>, vector<128x1280xf32>
    %cst = arith.constant dense<0.000000e+00> : vector<16x1280xf32>
    %2 = tpu.matmul %0, %1, %cst {dimension_numbers = #tpu.dot_dimension_numbers<[1], [0], [0], [1], [0, 0, 1, 1], [], []>} : vector<16x128xf32>, vector<128x1280xf32>, vector<16x1280xf32> -> vector<16x1280xf32>
    %c0_3 = arith.constant 0 : index
    %c0_4 = arith.constant 0 : index
    %3 = vector.load %arg3[%c0_3, %c0_4] : memref<16x1280xf32, #tpu.memory_space<vmem>>, vector<16x1280xf32>
    tpu.vector_store %arg3[%c0_3, %c0_4], %2 {strides = array<i32>} : memref<16x1280xf32, #tpu.memory_space<vmem>>, vector<16x1280xf32>,
    return
  }
  func.func @transform_0(%arg0: i32) -> (i32, i32) {
    %c0_i32 = arith.constant 0 : i32
    %c0_i32_0 = arith.constant 0 : i32
    return %arg0, %c0_i32 : i32, i32
  }
  func.func @transform_1(%arg0: i32) -> (i32, i32) {
    %c0_i32 = arith.constant 0 : i32
    %c0_i32_0 = arith.constant 0 : i32
    %c0_i32_1 = arith.constant 0 : i32
    return %c0_i32, %c0_i32_0 : i32, i32
  }
  func.func @transform_2(%arg0: i32) -> (i32, i32) {
    %c0_i32 = arith.constant 0 : i32
    %c0_i32_0 = arith.constant 0 : i32
    return %arg0, %c0_i32 : i32, i32
  }
}

</mosaic_0001>

<bundles_post_ra>
// kernel: tpu_custom_call.1
= control target key start
LH: loop header
LB: loop body
LE: loop exit
PB: predicated region body
PF: predicated region fallthrough
CT: control target
= control target key end

     0   :  { %7 = vsyncpa [#allocation3], 0  ;;  %s654_s0 = inlined_call_operand.hbm [shape: f32[16,128], index: 0, kind: input, shape index: {}]   ;;  %s655_s1 = inlined_call_operand.hbm [shape: f32[128,1280], index: 1, kind: input, shape index: {}]   ;;  %s656_s2 = inlined_call_operand.hbm [shape: f32[16,1280], index: 2, kind: output, shape index: {}]  }
   0x1   :  { %8 = vsyncpa [#allocation6], 0 }
   0x2   :  { %9 = vsyncpa [#allocation4], 0  ;;  %s14_s11 = sshll.u32 %s654_s0, 4  ;;  %s593_s12 = smov [#allocation2]   ;;  %s15_s11 = int_to_ptr.hbm [resolvable:$true] %s14_s11 }
   0x3   :  { %s16_s13 = sshll.u32 %s593_s12, 4  ;;  %s27_s16 = sshll.u32 %s655_s1, 4  ;;  %s17_s13 = int_to_ptr.vmem [resolvable:$true] %s16_s13  ;;  %s28_s16 = int_to_ptr.hbm [resolvable:$true] %s27_s16 }
   0x4   :  { %s594_s17 = smov 128   ;;  %s595_s18 = smov 8  }
   0x5   :  { %22 = dma.hbm_to_vmem [thread:$0]  %s15_s11, 256, %s17_s13, [#allocation3], %s594_s17, %s594_s17, %s595_s18  }
   0x6   :  { %s596_s19 = smov [#allocation5]   ;;  %s597_s21 = smov 1280  }
   0x7   :  { %s29_s20 = sshll.u32 %s596_s19, 4  ;;  %s598_s22 = smov 80   ;;  %s30_s20 = int_to_ptr.vmem [resolvable:$true] %s29_s20 }
   0x8   :  { %35 = dma.hbm_to_vmem [thread:$0]  %s28_s16, 20480, %s30_s20, [#allocation6], %s597_s21, %s597_s21, %s598_s22  }
   0x9   :  { %587 = dma.done.wait [#allocation3], 256  }
   0xa   :  { %588 = vsyncadd [#allocation3], 4294967040 }
   0xb   :  { %589 = dma.done.wait [#allocation6], 20480  }
   0xc   :  { %590 = vsyncadd [#allocation6], 4294946816  ;;  %v198_v0 = vld [vmem:[#allocation5 + $0x4c0] sm:$0xff]  ;;  %v199_v1 = vld [vmem:[#allocation5 + $0x4c8] sm:$0xff]  ;;  %s599_s0 = smov [#allocation7]   ;;  %s462_s25 = sshll.u32 %s656_s2, 4  ;;  %s463_s25 = int_to_ptr.hbm [resolvable:$true] %s462_s25 }
   0xd   :  { %v188_v2 = vld [vmem:[#allocation5 + $0x470] sm:$0xff]  ;;  %252 = vmatpush.msra.mxu2 %v198_v0  ;;  %275 = vmatpush.msra.mxu3 %v199_v1  ;;  %v189_v3 = vld [vmem:[#allocation5 + $0x478] sm:$0xff]  ;;  %v178_v4 = vld [vmem:[#allocation5 + $0x420] sm:$0xff]  ;;  %s460_s1 = sshll.u32 %s599_s0, 4  ;;  %s461_s1 = int_to_ptr.vmem [resolvable:$true] %s460_s1 }
   0xe   :  { %v179_v5 = vld [vmem:[#allocation5 + $0x428] sm:$0xff]  ;;  %v196_v6 = vld [vmem:[#allocation5 + $0x4b0] sm:$0xff]  ;;  %v197_v7 = vld [vmem:[#allocation5 + $0x4b8] sm:$0xff] }
   0xf   :  { %253 = vmatpush.msra.mxu2 %v188_v2  ;;  %276 = vmatpush.msra.mxu3 %v189_v3  ;;  %v186_v8 = vld [vmem:[#allocation5 + $0x460] sm:$0xff]  ;;  %v187_v9 = vld [vmem:[#allocation5 + $0x468] sm:$0xff]  ;;  %v168_v10 = vld [vmem:[#allocation5 + $0x3d0] sm:$0xff] }
  0x10   :  { %206 = vmatpush.msra.mxu0 %v196_v6  ;;  %229 = vmatpush.msra.mxu1 %v197_v7  ;;  %v169_v11 = vld [vmem:[#allocation5 + $0x3d8] sm:$0xff]  ;;  %v176_v12 = vld [vmem:[#allocation5 + $0x410] sm:$0xff]  ;;  %v158_v14 = vld [vmem:[#allocation5 + $0x380] sm:$0xff] }
  0x11   :  { %254 = vmatpush.msra.mxu2 %v178_v4  ;;  %277 = vmatpush.msra.mxu3 %v179_v5  ;;  %v177_v13 = vld [vmem:[#allocation5 + $0x418] sm:$0xff]  ;;  %v159_v15 = vld [vmem:[#allocation5 + $0x388] sm:$0xff]  ;;  %v166_v16 = vld [vmem:[#allocation5 + $0x3c0] sm:$0xff] }
  0x12   :  { %207 = vmatpush.msra.mxu0 %v186_v8  ;;  %230 = vmatpush.msra.mxu1 %v187_v9  ;;  %v167_v17 = vld [vmem:[#allocation5 + $0x3c8] sm:$0xff]  ;;  %v148_v18 = vld [vmem:[#allocation5 + $0x330] sm:$0xff]  ;;  %v149_v19 = vld [vmem:[#allocation5 + $0x338] sm:$0xff] }
  0x13   :  { %255 = vmatpush.msra.mxu2 %v168_v10  ;;  %278 = vmatpush.msra.mxu3 %v169_v11  ;;  %v156_v20 = vld [vmem:[#allocation5 + $0x370] sm:$0xff]  ;;  %v157_v21 = vld [vmem:[#allocation5 + $0x378] sm:$0xff]  ;;  %v138_v22 = vld [vmem:[#allocation5 + $0x2e0] sm:$0xff] }
  0x14   :  { %208 = vmatpush.msra.mxu0 %v176_v12  ;;  %231 = vmatpush.msra.mxu1 %v177_v13  ;;  %v139_v23 = vld [vmem:[#allocation5 + $0x2e8] sm:$0xff]  ;;  %v146_v24 = vld [vmem:[#allocation5 + $0x320] sm:$0xff]  ;;  %v128_v26 = vld [vmem:[#allocation5 + $0x290] sm:$0xff] }
  0x15   :  { %256 = vmatpush.msra.mxu2 %v158_v14  ;;  %279 = vmatpush.msra.mxu3 %v159_v15  ;;  %v147_v25 = vld [vmem:[#allocation5 + $0x328] sm:$0xff]  ;;  %v129_v27 = vld [vmem:[#allocation5 + $0x298] sm:$0xff]  ;;  %v136_v28 = vld [vmem:[#allocation5 + $0x2d0] sm:$0xff] }
  0x16   :  { %209 = vmatpush.msra.mxu0 %v166_v16  ;;  %232 = vmatpush.msra.mxu1 %v167_v17  ;;  %v137_v29 = vld [vmem:[#allocation5 + $0x2d8] sm:$0xff]  ;;  %v118_v30 = vld [vmem:[#allocation5 + $0x240] sm:$0xff]  ;;  %v119_v31 = vld [vmem:[#allocation5 + $0x248] sm:$0xff] }
  0x17   :  { %257 = vmatpush.msra.mxu2 %v148_v18  ;;  %280 = vmatpush.msra.mxu3 %v149_v19  ;;  %v126_v32 = vld [vmem:[#allocation5 + $0x280] sm:$0xff]  ;;  %v127_v33 = vld [vmem:[#allocation5 + $0x288] sm:$0xff]  ;;  %v108_v34 = vld [vmem:[#allocation5 + $0x1f0] sm:$0xff] }
  0x18   :  { %210 = vmatpush.msra.mxu0 %v156_v20  ;;  %233 = vmatpush.msra.mxu1 %v157_v21  ;;  %v109_v35 = vld [vmem:[#allocation5 + $0x1f8] sm:$0xff]  ;;  %v116_v36 = vld [vmem:[#allocation5 + $0x230] sm:$0xff]  ;;  %v98_v38 = vld [vmem:[#allocation5 + $0x1a0] sm:$0xff] }
  0x19   :  { %258 = vmatpush.msra.mxu2 %v138_v22  ;;  %281 = vmatpush.msra.mxu3 %v139_v23  ;;  %v117_v37 = vld [vmem:[#allocation5 + $0x238] sm:$0xff]  ;;  %v99_v39 = vld [vmem:[#allocation5 + $0x1a8] sm:$0xff]  ;;  %v106_v40 = vld [vmem:[#allocation5 + $0x1e0] sm:$0xff] }
  0x1a   :  { %211 = vmatpush.msra.mxu0 %v146_v24  ;;  %234 = vmatpush.msra.mxu1 %v147_v25  ;;  %v107_v41 = vld [vmem:[#allocation5 + $0x1e8] sm:$0xff]  ;;  %v88_v42 = vld [vmem:[#allocation5 + $0x150] sm:$0xff]  ;;  %v89_v43 = vld [vmem:[#allocation5 + $0x158] sm:$0xff] }
  0x1b   :  { %259 = vmatpush.msra.mxu2 %v128_v26  ;;  %282 = vmatpush.msra.mxu3 %v129_v27  ;;  %v96_v44 = vld [vmem:[#allocation5 + $0x190] sm:$0xff]  ;;  %v97_v45 = vld [vmem:[#allocation5 + $0x198] sm:$0xff]  ;;  %v78_v46 = vld [vmem:[#allocation5 + $0x100] sm:$0xff] }
  0x1c   :  { %212 = vmatpush.msra.mxu0 %v136_v28  ;;  %235 = vmatpush.msra.mxu1 %v137_v29  ;;  %v79_v47 = vld [vmem:[#allocation5 + $0x108] sm:$0xff]  ;;  %v86_v48 = vld [vmem:[#allocation5 + $0x140] sm:$0xff]  ;;  %v68_v50 = vld [vmem:[#allocation5 + $0xb0] sm:$0xff] }
  0x1d   :  { %260 = vmatpush.msra.mxu2 %v118_v30  ;;  %283 = vmatpush.msra.mxu3 %v119_v31  ;;  %v87_v49 = vld [vmem:[#allocation5 + $0x148] sm:$0xff]  ;;  %v69_v51 = vld [vmem:[#allocation5 + $0xb8] sm:$0xff]  ;;  %v76_v52 = vld [vmem:[#allocation5 + $0xf0] sm:$0xff] }
  0x1e   :  { %213 = vmatpush.msra.mxu0 %v126_v32  ;;  %236 = vmatpush.msra.mxu1 %v127_v33  ;;  %v77_v53 = vld [vmem:[#allocation5 + $0xf8] sm:$0xff]  ;;  %v58_v54 = vld [vmem:[#allocation5 + $0x60] sm:$0xff]  ;;  %v59_v55 = vld [vmem:[#allocation5 + $0x68] sm:$0xff] }
  0x1f   :  { %261 = vmatpush.msra.mxu2 %v108_v34  ;;  %284 = vmatpush.msra.mxu3 %v109_v35  ;;  %v66_v56 = vld [vmem:[#allocation5 + $0xa0] sm:$0xff]  ;;  %v67_v57 = vld [vmem:[#allocation5 + $0xa8] sm:$0xff]  ;;  %v48_v58 = vld [vmem:[#allocation5 + $0x10] sm:$0xff] }
  0x20   :  { %214 = vmatpush.msra.mxu0 %v116_v36  ;;  %237 = vmatpush.msra.mxu1 %v117_v37  ;;  %v49_v59 = vld [vmem:[#allocation5 + $0x18] sm:$0xff]  ;;  %v202_v60 = vld [vmem:[#allocation5 + $0x4e0] sm:$0xff]  ;;  %v203_v61 = vld [vmem:[#allocation5 + $0x4e8] sm:$0xff] }
  0x21   :  { %262 = vmatpush.msra.mxu2 %v98_v38  ;;  %285 = vmatpush.msra.mxu3 %v99_v39  ;;  %v56_v62 = vld [vmem:[#allocation5 + $0x50] sm:$0xff]  ;;  %v57_v63 = vld [vmem:[#allocation5 + $0x58] sm:$0xff]  ;;  %v46_v2 = vld [vmem:[#allocation5] sm:$0xff] }
  0x22   :  { %215 = vmatpush.msra.mxu0 %v106_v40  ;;  %238 = vmatpush.msra.mxu1 %v107_v41  ;;  %v192_v0 = vld [vmem:[#allocation5 + $0x490] sm:$0xff]  ;;  %v193_v1 = vld [vmem:[#allocation5 + $0x498] sm:$0xff]  ;;  %v47_v3 = vld [vmem:[#allocation5 + $0x8] sm:$0xff] }
  0x23   :  { %263 = vmatpush.msra.mxu2 %v88_v42  ;;  %286 = vmatpush.msra.mxu3 %v89_v43  ;;  %v182_v4 = vld [vmem:[#allocation5 + $0x440] sm:$0xff]  ;;  %v183_v5 = vld [vmem:[#allocation5 + $0x448] sm:$0xff]  ;;  %v200_v6 = vld [vmem:[#allocation5 + $0x4d0] sm:$0xff] }
  0x24   :  { %216 = vmatpush.msra.mxu0 %v96_v44  ;;  %239 = vmatpush.msra.mxu1 %v97_v45  ;;  %v201_v7 = vld [vmem:[#allocation5 + $0x4d8] sm:$0xff]  ;;  %v172_v8 = vld [vmem:[#allocation5 + $0x3f0] sm:$0xff]  ;;  %v190_v10 = vld [vmem:[#allocation5 + $0x480] sm:$0xff] }
  0x25   :  { %264 = vmatpush.msra.mxu2 %v78_v46  ;;  %287 = vmatpush.msra.mxu3 %v79_v47  ;;  %v173_v9 = vld [vmem:[#allocation5 + $0x3f8] sm:$0xff]  ;;  %v191_v11 = vld [vmem:[#allocation5 + $0x488] sm:$0xff]  ;;  %v162_v12 = vld [vmem:[#allocation5 + $0x3a0] sm:$0xff] }
  0x26   :  { %217 = vmatpush.msra.mxu0 %v86_v48  ;;  %240 = vmatpush.msra.mxu1 %v87_v49  ;;  %v163_v13 = vld [vmem:[#allocation5 + $0x3a8] sm:$0xff]  ;;  %v180_v14 = vld [vmem:[#allocation5 + $0x430] sm:$0xff]  ;;  %v181_v15 = vld [vmem:[#allocation5 + $0x438] sm:$0xff] }
  0x27   :  { %265 = vmatpush.msra.mxu2 %v68_v50  ;;  %288 = vmatpush.msra.mxu3 %v69_v51  ;;  %v152_v16 = vld [vmem:[#allocation5 + $0x350] sm:$0xff]  ;;  %v153_v17 = vld [vmem:[#allocation5 + $0x358] sm:$0xff]  ;;  %v170_v18 = vld [vmem:[#allocation5 + $0x3e0] sm:$0xff] }
  0x28   :  { %218 = vmatpush.msra.mxu0 %v76_v52  ;;  %241 = vmatpush.msra.mxu1 %v77_v53  ;;  %v171_v19 = vld [vmem:[#allocation5 + $0x3e8] sm:$0xff]  ;;  %v142_v20 = vld [vmem:[#allocation5 + $0x300] sm:$0xff]  ;;  %v160_v22 = vld [vmem:[#allocation5 + $0x390] sm:$0xff] }
  0x29   :  { %266 = vmatpush.msra.mxu2 %v58_v54  ;;  %289 = vmatpush.msra.mxu3 %v59_v55  ;;  %v143_v21 = vld [vmem:[#allocation5 + $0x308] sm:$0xff]  ;;  %v161_v23 = vld [vmem:[#allocation5 + $0x398] sm:$0xff]  ;;  %v132_v24 = vld [vmem:[#allocation5 + $0x2b0] sm:$0xff] }
  0x2a   :  { %219 = vmatpush.msra.mxu0 %v66_v56  ;;  %242 = vmatpush.msra.mxu1 %v67_v57  ;;  %v133_v25 = vld [vmem:[#allocation5 + $0x2b8] sm:$0xff]  ;;  %v150_v26 = vld [vmem:[#allocation5 + $0x340] sm:$0xff]  ;;  %v151_v27 = vld [vmem:[#allocation5 + $0x348] sm:$0xff] }
  0x2b   :  { %267 = vmatpush.msra.mxu2 %v48_v58  ;;  %290 = vmatpush.msra.mxu3 %v49_v59  ;;  %v122_v28 = vld [vmem:[#allocation5 + $0x260] sm:$0xff]  ;;  %v123_v29 = vld [vmem:[#allocation5 + $0x268] sm:$0xff]  ;;  %v140_v30 = vld [vmem:[#allocation5 + $0x2f0] sm:$0xff] }
  0x2c   :  { %220 = vmatpush.msra.mxu0 %v56_v62  ;;  %243 = vmatpush.msra.mxu1 %v57_v63  ;;  %v141_v31 = vld [vmem:[#allocation5 + $0x2f8] sm:$0xff]  ;;  %v112_v32 = vld [vmem:[#allocation5 + $0x210] sm:$0xff]  ;;  %v130_v34 = vld [vmem:[#allocation5 + $0x2a0] sm:$0xff] }
  0x2d   :  { %344 = vmatpush.msrb.mxu2 %v202_v60  ;;  %367 = vmatpush.msrb.mxu3 %v203_v61  ;;  %v113_v33 = vld [vmem:[#allocation5 + $0x218] sm:$0xff]  ;;  %v131_v35 = vld [vmem:[#allocation5 + $0x2a8] sm:$0xff]  ;;  %v102_v36 = vld [vmem:[#allocation5 + $0x1c0] sm:$0xff] }
  0x2e   :  { %221 = vmatpush.msra.mxu0 %v46_v2  ;;  %244 = vmatpush.msra.mxu1 %v47_v3  ;;  %v103_v37 = vld [vmem:[#allocation5 + $0x1c8] sm:$0xff]  ;;  %v120_v38 = vld [vmem:[#allocation5 + $0x250] sm:$0xff]  ;;  %v121_v39 = vld [vmem:[#allocation5 + $0x258] sm:$0xff] }
  0x2f   :  { %345 = vmatpush.msrb.mxu2 %v192_v0  ;;  %368 = vmatpush.msrb.mxu3 %v193_v1  ;;  %v92_v40 = vld [vmem:[#allocation5 + $0x170] sm:$0xff]  ;;  %v93_v41 = vld [vmem:[#allocation5 + $0x178] sm:$0xff]  ;;  %v110_v42 = vld [vmem:[#allocation5 + $0x200] sm:$0xff] }
  0x30   :  { %298 = vmatpush.msrb.mxu0 %v200_v6  ;;  %321 = vmatpush.msrb.mxu1 %v201_v7  ;;  %v111_v43 = vld [vmem:[#allocation5 + $0x208] sm:$0xff]  ;;  %v82_v44 = vld [vmem:[#allocation5 + $0x120] sm:$0xff]  ;;  %v100_v46 = vld [vmem:[#allocation5 + $0x1b0] sm:$0xff] }
  0x31   :  { %346 = vmatpush.msrb.mxu2 %v182_v4  ;;  %369 = vmatpush.msrb.mxu3 %v183_v5  ;;  %v83_v45 = vld [vmem:[#allocation5 + $0x128] sm:$0xff]  ;;  %v101_v47 = vld [vmem:[#allocation5 + $0x1b8] sm:$0xff]  ;;  %v72_v48 = vld [vmem:[#allocation5 + $0xd0] sm:$0xff] }
  0x32   :  { %299 = vmatpush.msrb.mxu0 %v190_v10  ;;  %322 = vmatpush.msrb.mxu1 %v191_v11  ;;  %v73_v49 = vld [vmem:[#allocation5 + $0xd8] sm:$0xff]  ;;  %v90_v50 = vld [vmem:[#allocation5 + $0x160] sm:$0xff]  ;;  %v91_v51 = vld [vmem:[#allocation5 + $0x168] sm:$0xff] }
  0x33   :  { %347 = vmatpush.msrb.mxu2 %v172_v8  ;;  %370 = vmatpush.msrb.mxu3 %v173_v9  ;;  %v62_v52 = vld [vmem:[#allocation5 + $0x80] sm:$0xff]  ;;  %v63_v53 = vld [vmem:[#allocation5 + $0x88] sm:$0xff]  ;;  %v624_v54 = vld [vmem:[#allocation2] sm:$0xff] }
  0x34   :  { %300 = vmatpush.msrb.mxu0 %v180_v14  ;;  %323 = vmatpush.msrb.mxu1 %v181_v15  ;;  %v80_v55 = vld [vmem:[#allocation5 + $0x110] sm:$0xff]  ;;  %v81_v56 = vld [vmem:[#allocation5 + $0x118] sm:$0xff]  ;;  %v70_v61 = vld [vmem:[#allocation5 + $0xc0] sm:$0xff] }
  0x35   :  { %348 = vmatpush.msrb.mxu2 %v162_v12  ;;  %371 = vmatpush.msrb.mxu3 %v163_v13  ;;  %v52_v57 = vld [vmem:[#allocation5 + $0x30] sm:$0xff]  ;;  %v53_v58 = vld [vmem:[#allocation5 + $0x38] sm:$0xff]  ;;  %v71_v62 = vld [vmem:[#allocation5 + $0xc8] sm:$0xff] }
  0x36   :  { %301 = vmatpush.msrb.mxu0 %v170_v18  ;;  %324 = vmatpush.msrb.mxu1 %v171_v19  ;;  %v204_v59 = vld [vmem:[#allocation5 + $0x4f0] sm:$0xff]  ;;  %v205_v60 = vld [vmem:[#allocation5 + $0x4f8] sm:$0xff]  ;;  %v194_v63 = vld [vmem:[#allocation5 + $0x4a0] sm:$0xff] }
  0x37   :  { %349 = vmatpush.msrb.mxu2 %v152_v16  ;;  %372 = vmatpush.msrb.mxu3 %v153_v17  ;;  %v195_v0 = vld [vmem:[#allocation5 + $0x4a8] sm:$0xff]  ;;  %v60_v1 = vld [vmem:[#allocation5 + $0x70] sm:$0xff]  ;;  %v61_v2 = vld [vmem:[#allocation5 + $0x78] sm:$0xff] }
  0x38   :  { %302 = vmatpush.msrb.mxu0 %v160_v22  ;;  %325 = vmatpush.msrb.mxu1 %v161_v23  ;;  %v184_v3 = vld [vmem:[#allocation5 + $0x450] sm:$0xff]  ;;  %v185_v4 = vld [vmem:[#allocation5 + $0x458] sm:$0xff]  ;;  %v50_v5 = vld [vmem:[#allocation5 + $0x20] sm:$0xff] }
  0x39   :  { %350 = vmatpush.msrb.mxu2 %v142_v20  ;;  %373 = vmatpush.msrb.mxu3 %v143_v21  ;;  %v51_v6 = vld [vmem:[#allocation5 + $0x28] sm:$0xff]  ;;  %v174_v7 = vld [vmem:[#allocation5 + $0x400] sm:$0xff]  ;;  %v630_v9 = vld [vmem:[#allocation2 + $0x8] sm:$0xff] }
  0x3a   :  { %303 = vmatpush.msrb.mxu0 %v150_v26  ;;  %326 = vmatpush.msrb.mxu1 %v151_v27  ;;  %v175_v8 = vld [vmem:[#allocation5 + $0x408] sm:$0xff]  ;;  %v164_v10 = vld [vmem:[#allocation5 + $0x3b0] sm:$0xff]  ;;  %v165_v11 = vld [vmem:[#allocation5 + $0x3b8] sm:$0xff] }
  0x3b   :  { %351 = vmatpush.msrb.mxu2 %v132_v24  ;;  %374 = vmatpush.msrb.mxu3 %v133_v25  ;;  %v154_v12 = vld [vmem:[#allocation5 + $0x360] sm:$0xff]  ;;  %v155_v13 = vld [vmem:[#allocation5 + $0x368] sm:$0xff]  ;;  %v144_v14 = vld [vmem:[#allocation5 + $0x310] sm:$0xff] }
  0x3c   :  { %304 = vmatpush.msrb.mxu0 %v140_v30  ;;  %327 = vmatpush.msrb.mxu1 %v141_v31  ;;  %v145_v15 = vld [vmem:[#allocation5 + $0x318] sm:$0xff]  ;;  %v134_v16 = vld [vmem:[#allocation5 + $0x2c0] sm:$0xff]  ;;  %v135_v17 = vld [vmem:[#allocation5 + $0x2c8] sm:$0xff] }
  0x3d   :  { %352 = vmatpush.msrb.mxu2 %v122_v28  ;;  %375 = vmatpush.msrb.mxu3 %v123_v29  ;;  %v124_v18 = vld [vmem:[#allocation5 + $0x270] sm:$0xff]  ;;  %v125_v19 = vld [vmem:[#allocation5 + $0x278] sm:$0xff]  ;;  %v114_v20 = vld [vmem:[#allocation5 + $0x220] sm:$0xff] }
  0x3e   :  { %305 = vmatpush.msrb.mxu0 %v130_v34  ;;  %328 = vmatpush.msrb.mxu1 %v131_v35  ;;  %v115_v21 = vld [vmem:[#allocation5 + $0x228] sm:$0xff]  ;;  %v104_v22 = vld [vmem:[#allocation5 + $0x1d0] sm:$0xff]  ;;  %v105_v23 = vld [vmem:[#allocation5 + $0x1d8] sm:$0xff] }
  0x3f   :  { %353 = vmatpush.msrb.mxu2 %v112_v32  ;;  %376 = vmatpush.msrb.mxu3 %v113_v33  ;;  %v94_v24 = vld [vmem:[#allocation5 + $0x180] sm:$0xff]  ;;  %v95_v25 = vld [vmem:[#allocation5 + $0x188] sm:$0xff]  ;;  %v84_v26 = vld [vmem:[#allocation5 + $0x130] sm:$0xff] }
  0x40   :  { %306 = vmatpush.msrb.mxu0 %v120_v38  ;;  %329 = vmatpush.msrb.mxu1 %v121_v39  ;;  %v85_v27 = vld [vmem:[#allocation5 + $0x138] sm:$0xff]  ;;  %v74_v28 = vld [vmem:[#allocation5 + $0xe0] sm:$0xff]  ;;  %v75_v29 = vld [vmem:[#allocation5 + $0xe8] sm:$0xff] }
  0x41   :  { %354 = vmatpush.msrb.mxu2 %v102_v36  ;;  %377 = vmatpush.msrb.mxu3 %v103_v37  ;;  %v64_v30 = vld [vmem:[#allocation5 + $0x90] sm:$0xff]  ;;  %v65_v31 = vld [vmem:[#allocation5 + $0x98] sm:$0xff]  ;;  %v54_v32 = vld [vmem:[#allocation5 + $0x40] sm:$0xff] }
  0x42   :  { %307 = vmatpush.msrb.mxu0 %v110_v42  ;;  %330 = vmatpush.msrb.mxu1 %v111_v43  ;;  %v55_v33 = vld [vmem:[#allocation5 + $0x48] sm:$0xff] }
  0x43   :  { %355 = vmatpush.msrb.mxu2 %v92_v40  ;;  %378 = vmatpush.msrb.mxu3 %v93_v41 }
  0x44   :  { %308 = vmatpush.msrb.mxu0 %v100_v46  ;;  %331 = vmatpush.msrb.mxu1 %v101_v47 }
  0x45   :  { %356 = vmatpush.msrb.mxu2 %v82_v44  ;;  %379 = vmatpush.msrb.mxu3 %v83_v45 }
  0x46   :  { %309 = vmatpush.msrb.mxu0 %v90_v50  ;;  %332 = vmatpush.msrb.mxu1 %v91_v51 }
  0x47   :  { %357 = vmatpush.msrb.mxu2 %v72_v48  ;;  %380 = vmatpush.msrb.mxu3 %v73_v49 }
  0x48   :  { %268 = vmatmul.f32.vlgmr.msra.gmra.mxu2 %v624_v54  ;;  %291 = vmatmul.f32.vlgmr.msra.gmra.mxu3 %v624_v54 }
  0x49   :  { %358 = vmatpush.msrb.mxu2 %v62_v52  ;;  %381 = vmatpush.msrb.mxu3 %v63_v53 }
  0x4a   :  { %310 = vmatpush.msrb.mxu0 %v80_v55  ;;  %333 = vmatpush.msrb.mxu1 %v81_v56 }
  0x4b   :  { %359 = vmatpush.msrb.mxu2 %v52_v57  ;;  %382 = vmatpush.msrb.mxu3 %v53_v58 }
  0x4c   :  { %311 = vmatpush.msrb.mxu0 %v70_v61  ;;  %334 = vmatpush.msrb.mxu1 %v71_v62 }
  0x4d   :  { %476 = vmatpush.msra.mxu2 %v204_v59  ;;  %492 = vmatpush.msra.mxu3 %v205_v60 }
  0x4e   :  { %312 = vmatpush.msrb.mxu0 %v60_v1  ;;  %335 = vmatpush.msrb.mxu1 %v61_v2 }
  0x4f   :  { %477 = vmatpush.msra.mxu2 %v194_v63  ;;  %493 = vmatpush.msra.mxu3 %v195_v0 }
  0x50   :  { %222 = vmatmul.f32.vlgmr.msra.gmra.mxu0 %v624_v54  ;;  %245 = vmatmul.f32.vlgmr.msra.gmra.mxu1 %v624_v54 }
  0x51   :  { %478 = vmatpush.msra.mxu2 %v184_v3  ;;  %494 = vmatpush.msra.mxu3 %v185_v4 }
  0x52   :  { %313 = vmatpush.msrb.mxu0 %v50_v5  ;;  %336 = vmatpush.msrb.mxu1 %v51_v6 }
  0x53   :  { %479 = vmatpush.msra.mxu2 %v174_v7  ;;  %495 = vmatpush.msra.mxu3 %v175_v8 }
  0x54   :  { %390 = vmatpush.msra.mxu0 %v204_v59  ;;  %413 = vmatpush.msra.mxu1 %v205_v60 }
  0x55   :  { %271 = vmatmul.f32.gmra.mxu2 %v630_v9  ;;  %294 = vmatmul.f32.gmra.mxu3 %v630_v9 }
  0x56   :  { %391 = vmatpush.msra.mxu0 %v194_v63  ;;  %480 = vmatpush.msra.mxu2 %v164_v10 }
  0x57   :  { %414 = vmatpush.msra.mxu1 %v195_v0  ;;  %496 = vmatpush.msra.mxu3 %v165_v11 }
  0x58   :  { %392 = vmatpush.msra.mxu0 %v184_v3  ;;  %481 = vmatpush.msra.mxu2 %v154_v12 }
  0x59   :  { %415 = vmatpush.msra.mxu1 %v185_v4  ;;  %497 = vmatpush.msra.mxu3 %v155_v13 }
  0x5a   :  { %393 = vmatpush.msra.mxu0 %v174_v7  ;;  %482 = vmatpush.msra.mxu2 %v144_v14 }
  0x5b   :  { %416 = vmatpush.msra.mxu1 %v175_v8  ;;  %498 = vmatpush.msra.mxu3 %v145_v15 }
  0x5c   :  { %225 = vmatmul.f32.gmra.mxu0 %v630_v9  ;;  %248 = vmatmul.f32.gmra.mxu1 %v630_v9 }
  0x5d   :  { %394 = vmatpush.msra.mxu0 %v164_v10  ;;  %483 = vmatpush.msra.mxu2 %v134_v16 }
  0x5e   :  { %417 = vmatpush.msra.mxu1 %v165_v11  ;;  %499 = vmatpush.msra.mxu3 %v135_v17 }
  0x5f   :  { %360 = vmatmul.f32.vlgmr.msrb.gmra.mxu2 %v624_v54  ;;  %383 = vmatmul.f32.vlgmr.msrb.gmra.mxu3 %v624_v54 }
  0x60   :  { %395 = vmatpush.msra.mxu0 %v154_v12  ;;  %484 = vmatpush.msra.mxu2 %v124_v18 }
  0x61   :  { %418 = vmatpush.msra.mxu1 %v155_v13  ;;  %500 = vmatpush.msra.mxu3 %v125_v19 }
  0x62   :  { %396 = vmatpush.msra.mxu0 %v144_v14  ;;  %485 = vmatpush.msra.mxu2 %v114_v20 }
  0x63   :  { %419 = vmatpush.msra.mxu1 %v145_v15  ;;  %501 = vmatpush.msra.mxu3 %v115_v21 }
  0x64   :  { %397 = vmatpush.msra.mxu0 %v134_v16  ;;  %486 = vmatpush.msra.mxu2 %v104_v22 }
  0x65   :  { %420 = vmatpush.msra.mxu1 %v135_v17  ;;  %502 = vmatpush.msra.mxu3 %v105_v23 }
  0x66   :  { %314 = vmatmul.f32.vlgmr.msrb.gmra.mxu0 %v624_v54  ;;  %337 = vmatmul.f32.vlgmr.msrb.gmra.mxu1 %v624_v54 }
  0x67   :  { %398 = vmatpush.msra.mxu0 %v124_v18  ;;  %487 = vmatpush.msra.mxu2 %v94_v24 }
  0x68   :  { %421 = vmatpush.msra.mxu1 %v125_v19  ;;  %503 = vmatpush.msra.mxu3 %v95_v25 }
  0x69   :  { %363 = vmatmul.f32.gmra.mxu2 %v630_v9  ;;  %386 = vmatmul.f32.gmra.mxu3 %v630_v9 }
  0x6a   :  { %399 = vmatpush.msra.mxu0 %v114_v20  ;;  %488 = vmatpush.msra.mxu2 %v84_v26 }
  0x6b   :  { %422 = vmatpush.msra.mxu1 %v115_v21  ;;  %504 = vmatpush.msra.mxu3 %v85_v27 }
  0x6c   :  { %400 = vmatpush.msra.mxu0 %v104_v22  ;;  %489 = vmatpush.msra.mxu2 %v74_v28 }
  0x6d   :  { %423 = vmatpush.msra.mxu1 %v105_v23  ;;  %505 = vmatpush.msra.mxu3 %v75_v29 }
  0x6e   :  { %401 = vmatpush.msra.mxu0 %v94_v24  ;;  %490 = vmatpush.msra.mxu2 %v64_v30 }
  0x6f   :  { %424 = vmatpush.msra.mxu1 %v95_v25  ;;  %506 = vmatpush.msra.mxu3 %v65_v31 }
  0x70   :  { %317 = vmatmul.f32.gmra.mxu0 %v630_v9  ;;  %340 = vmatmul.f32.gmra.mxu1 %v630_v9 }
  0x71   :  { %402 = vmatpush.msra.mxu0 %v84_v26  ;;  %491 = vmatpush.msra.mxu2 %v54_v32 }
  0x72   :  { %425 = vmatpush.msra.mxu1 %v85_v27  ;;  %507 = vmatpush.msra.mxu3 %v55_v33 }
  0x73   :  { %409 = vmatmul.f32.vlgmr.msra.gmra.mxu2 %v630_v9  ;;  %432 = vmatmul.f32.vlgmr.msra.gmra.mxu3 %v630_v9 }
  0x74   :  { %403 = vmatpush.msra.mxu0 %v74_v28  ;;  %426 = vmatpush.msra.mxu1 %v75_v29 }
  0x76   :  { %404 = vmatpush.msra.mxu0 %v64_v30  ;;  %427 = vmatpush.msra.mxu1 %v65_v31 }
  0x78   :  { %405 = vmatpush.msra.mxu0 %v54_v32  ;;  %428 = vmatpush.msra.mxu1 %v55_v33 }
  0x79   :  { %406 = vmatmul.f32.vlgmr.msra.gmra.mxu0 %v624_v54  ;;  %429 = vmatmul.f32.vlgmr.msra.gmra.mxu1 %v624_v54 }
  0xcb   :  { %v269_v34 = vpop.f32.mrf.mxu2  ;;  %v292_v35 = vpop.f32.mrf.mxu3 }
  0xcc   :  { %438 = vst [vmem:[#allocation7 + $0x10] sm:$0xff] %v269_v34 }
  0xcd   :  { %v223_v36 = vpop.f32.mrf.mxu0  ;;  %v246_v37 = vpop.f32.mrf.mxu1  ;;  %439 = vst [vmem:[#allocation7 + $0x18] sm:$0xff] %v292_v35 }
  0xce   :  { %436 = vst [vmem:[#allocation7] sm:$0xff] %v223_v36 }
  0xcf   :  { %437 = vst [vmem:[#allocation7 + $0x8] sm:$0xff] %v246_v37 }
  0xd8   :  { %v272_v38 = vpop.f32.mrf.mxu2  ;;  %v295_v39 = vpop.f32.mrf.mxu3 }
  0xd9   :  { %v226_v40 = vpop.f32.mrf.mxu0  ;;  %v249_v41 = vpop.f32.mrf.mxu1  ;;  %448 = vst [vmem:[#allocation7 + $0x60] sm:$0xff] %v272_v38 }
  0xda   :  { %446 = vst [vmem:[#allocation7 + $0x50] sm:$0xff] %v226_v40 }
  0xdb   :  { %447 = vst [vmem:[#allocation7 + $0x58] sm:$0xff] %v249_v41 }
  0xdc   :  { %449 = vst [vmem:[#allocation7 + $0x68] sm:$0xff] %v295_v39 }
  0xe2   :  { %v361_v42 = vpop.f32.mrf.mxu2  ;;  %v384_v43 = vpop.f32.mrf.mxu3 }
  0xe3   :  { %v315_v44 = vpop.f32.mrf.mxu0  ;;  %v338_v45 = vpop.f32.mrf.mxu1  ;;  %442 = vst [vmem:[#allocation7 + $0x30] sm:$0xff] %v361_v42 }
  0xe4   :  { %440 = vst [vmem:[#allocation7 + $0x20] sm:$0xff] %v315_v44 }
  0xe5   :  { %441 = vst [vmem:[#allocation7 + $0x28] sm:$0xff] %v338_v45 }
  0xe6   :  { %443 = vst [vmem:[#allocation7 + $0x38] sm:$0xff] %v384_v43 }
  0xec   :  { %v364_v46 = vpop.f32.mrf.mxu2  ;;  %v387_v47 = vpop.f32.mrf.mxu3 }
  0xed   :  { %v318_v48 = vpop.f32.mrf.mxu0  ;;  %v341_v49 = vpop.f32.mrf.mxu1  ;;  %452 = vst [vmem:[#allocation7 + $0x80] sm:$0xff] %v364_v46 }
  0xee   :  { %450 = vst [vmem:[#allocation7 + $0x70] sm:$0xff] %v318_v48 }
  0xef   :  { %451 = vst [vmem:[#allocation7 + $0x78] sm:$0xff] %v341_v49 }
  0xf0   :  { %453 = vst [vmem:[#allocation7 + $0x88] sm:$0xff] %v387_v47 }
  0xf6   :  { %v407_v50 = vpop.f32.mrf.mxu0  ;;  %v410_v51 = vpop.f32.mrf.mxu2 }
  0xf7   :  { %444 = vst [vmem:[#allocation7 + $0x40] sm:$0xff] %v407_v50  ;;  %v430_v52 = vpop.f32.mrf.mxu1  ;;  %v433_v53 = vpop.f32.mrf.mxu3 }
  0xf8   :  { %454 = vst [vmem:[#allocation7 + $0x90] sm:$0xff] %v410_v51 }
  0xf9   :  { %445 = vst [vmem:[#allocation7 + $0x48] sm:$0xff] %v430_v52 }
  0xfa   :  { %455 = vst [vmem:[#allocation7 + $0x98] sm:$0xff] %v433_v53 }
  0xfb   :  { %468 = dma.vmem_to_hbm [thread:$0]  %s461_s1, 2560, %s463_s25, [#allocation4], %s597_s21, %s597_s21, %s598_s22  }
  0xfc   :  { %591 = dma.done.wait [#allocation4], 2560  }
  0xfd   :  { %592 = vsyncadd [#allocation4], 4294964736 }
  0xfe   :  { %473 = vsyncpa [#allocation3], 1 }
  0xff   :  { %474 = vsyncpa [#allocation6], 1 }
 0x100   :  { %475 = vsyncpa [#allocation4], 1 }

</bundles_post_ra>
